<compile_context>
chip_gen: v6e
topology: v6e:2x2x1
jax: 0.10.0
libtpu: 0.0.40
codegen_flags: <defaults>
</compile_context>

<pallas_src>
import jax
import jax.numpy as jnp
from jax.experimental import pallas as pl
from jax.experimental.pallas import tpu as pltpu

LEAKY_SLOPE = 0.01   # torch.nn.LeakyReLU default negative_slope
BN_EPS = 1e-5        # torch.nn.BatchNorm1d default eps
LANE = 128


# --------------------------------------------------------------------------
# Kernel
# --------------------------------------------------------------------------
def _linear_bn_lrelu_kernel(x_ref, w_ref, gb_ref, o_ref):
    """One (B, tn) output tile: LeakyReLU(BatchNorm1d(x @ W[:, tile])).

    BatchNorm1d in training mode: per-feature batch mean and *biased* variance.
    Each grid step owns a disjoint set of output features and the full batch,
    so the statistics are exact with no cross-tile reduction.  The Linear bias
    is omitted because mean subtraction cancels it exactly.
    """
    x = x_ref[...]                                     # (B, Fin)   bf16
    w = w_ref[...]                                     # (Fin, tn)  bf16
    # MXU matmul with f32 accumulation; epilogue entirely in f32.
    y = jnp.dot(x, w, preferred_element_type=jnp.float32)          # (B, tn)

    mean = jnp.mean(y, axis=0, keepdims=True)                      # (1, tn)
    diff = y - mean
    var = jnp.mean(diff * diff, axis=0, keepdims=True)             # biased var

    gb = gb_ref[...]                                   # (2, tn) f32
    gamma = gb[0:1, :]
    beta = gb[1:2, :]
    scale = gamma * jax.lax.rsqrt(var + BN_EPS)        # rsqrt -> EUP slot
    shift = beta - mean * scale
    y = y * scale + shift

    o_ref[...] = jnp.maximum(y, LEAKY_SLOPE * y)       # LeakyReLU


# --------------------------------------------------------------------------
# Hardware queries (best-effort, safe fallbacks)
# --------------------------------------------------------------------------
def _cdiv(a, b):
    return -(-a // b)


def _round_up(a, b):
    return _cdiv(a, b) * b


def _vmem_capacity_bytes() -> int:
    try:
        cap = getattr(pltpu.get_tpu_info(), "vmem_capacity_bytes", None)
        if isinstance(cap, int) and cap > 0:
            return cap
    except Exception:
        pass
    return 64 << 20   # conservative default (v7x per-TC VMEM)


def _num_tensorcores() -> int:
    try:
        info = pltpu.get_tpu_info()
        for attr in ("num_cores", "core_count", "num_tensorcores",
                     "tensorcore_count", "cores_per_chip"):
            n = getattr(info, attr, None)
            if isinstance(n, int) and 1 <= n <= 8:
                return n
    except Exception:
        pass
    try:
        if "v7" in jax.devices()[0].device_kind.lower():
            return 2
    except Exception:
        pass
    return 1


# --------------------------------------------------------------------------
# Tile planning + one-time weight prep
# --------------------------------------------------------------------------
def _plan_tiles(batch, f_in, f_out):
    """Pick a lane-dense Fout tile tn and pad Fout up to a multiple of it."""
    f128 = _round_up(f_out, LANE)
    n128 = f128 // LANE

    # VMEM budget ~50% of generation-aware capacity; Pallas double-buffers
    # every input/output block (including the grid-invariant x block).
    budget = _vmem_capacity_bytes() // 2
    fixed = 2 * batch * f_in * 2                                   # x (bf16)
    per_col = 2 * (f_in * 2 + 2 * 4 + batch * 4)   # w bf16 + gb f32 + out f32
    tn_max = max((budget - fixed) // max(per_col, 1), LANE)
    tn_max = max(LANE, (tn_max // LANE) * LANE)

    # At least one tile per TensorCore so the "parallel" Fout axis feeds the
    # v7x megacore; single biggest tile on 1-TC chips.
    ntc = _num_tensorcores()
    ntiles = max(_cdiv(f128, tn_max), min(ntc, n128))
    tn = LANE * _cdiv(n128, ntiles)
    ntiles = _cdiv(f128, tn)
    f_pad = tn * ntiles
    return tn, ntiles, f_pad


def build_forward(params, *, batch_hint=8):
    """One-time prep (pad + bf16 cast of W, stack gamma/beta) + jitted forward.

    Returns (forward, w_p, gb_p); call as forward(x, w_p, gb_p).
    """
    w = params["w"]
    f_in, f_out = w.shape
    tn, grid_n, f_pad = _plan_tiles(batch_hint, f_in, f_out)
    pad = f_pad - f_out

    # Hoisted out of the per-call path: weight bf16 cast + zero pad, affine stack.
    w_p = jnp.pad(w.astype(jnp.bfloat16), ((0, 0), (0, pad)))           # (Fin, Fpad)
    gb_p = jnp.pad(jnp.stack([params["gamma"], params["beta"]]).astype(jnp.float32),
                   ((0, 0), (0, pad)))                                  # (2, Fpad)

    vmem_cap = _vmem_capacity_bytes()

    @jax.jit
    def forward(x, w_p, gb_p):
        B, fin = x.shape
        assert fin == f_in, (fin, f_in)
        # PyTorch BatchNorm1d raises for batch size 1 in training mode.
        assert B >= 2, "BatchNorm1d (training) requires batch >= 2"

        x_bf = x.astype(jnp.bfloat16)

        # Actual double-buffered working set for this plan (+ headroom).
        work = (2 * B * f_in * 2          # x bf16
                + 2 * f_in * tn * 2       # weight tile bf16
                + 2 * 2 * tn * 4          # gamma/beta tile f32
                + 2 * B * tn * 4)         # output tile f32
        vmem_limit = min(max(work + (2 << 20), 4 << 20), vmem_cap // 2)

        cost = pl.CostEstimate(
            flops=2 * B * f_in * f_pad,
            transcendentals=f_pad,                       # one rsqrt per feature
            bytes_accessed=(B * f_in * 2 + f_in * f_pad * 2
                            + 2 * f_pad * 4 + B * f_pad * 4),
        )

        out = pl.pallas_call(
            _linear_bn_lrelu_kernel,
            out_shape=jax.ShapeDtypeStruct((B, f_pad), jnp.float32),
            grid_spec=pltpu.PrefetchScalarGridSpec(
                num_scalar_prefetch=0,
                grid=(grid_n,),
                in_specs=[
                    pl.BlockSpec((B, f_in), lambda j: (0, 0)),    # x (grid-invariant)
                    pl.BlockSpec((f_in, tn), lambda j: (0, j)),   # weight columns
                    pl.BlockSpec((2, tn), lambda j: (0, j)),      # [gamma; beta]
                ],
                out_specs=pl.BlockSpec((B, tn), lambda j: (0, j)),
            ),
            compiler_params=pltpu.CompilerParams(
                dimension_semantics=("parallel",),   # shard Fout tiles across TCs
                vmem_limit_bytes=int(vmem_limit),
            ),
            cost_estimate=cost,
        )(x_bf, w_p, gb_p)

        return out[:, :f_out]

    return forward, w_p, gb_p


# --------------------------------------------------------------------------
# Params + pure-JAX reference
# --------------------------------------------------------------------------
def init_params(key, input_dim, output_dim):
    """Deterministic init matching torch.nn.Linear / BatchNorm1d defaults."""
    kw, kb = jax.random.split(key)
    bound = 1.0 / (input_dim ** 0.5)
    # PyTorch Linear stores weight as (out, in); keep it pre-transposed (in, out).
    w = jax.random.uniform(kw, (input_dim, output_dim), jnp.float32, -bound, bound)
    b = jax.random.uniform(kb, (output_dim,), jnp.float32, -bound, bound)
    gamma = jnp.ones((output_dim,), jnp.float32)   # BatchNorm1d weight default
    beta = jnp.zeros((output_dim,), jnp.float32)   # BatchNorm1d bias default
    return {"w": w, "b": b, "gamma": gamma, "beta": beta}


def _reference_forward(x, params):
    """Pure-JAX reference (keeps the Linear bias; BN cancels it exactly)."""
    xb = x.astype(jnp.bfloat16).astype(jnp.float32)
    wb = params["w"].astype(jnp.bfloat16).astype(jnp.float32)
    y = xb @ wb + params["b"]
    mean = jnp.mean(y, axis=0, keepdims=True)
    var = jnp.mean((y - mean) ** 2, axis=0, keepdims=True)
    y = params["gamma"] * (y - mean) * jax.lax.rsqrt(var + BN_EPS) + params["beta"]
    return jnp.maximum(y, LEAKY_SLOPE * y)


# --------------------------------------------------------------------------
# Smoke test
# --------------------------------------------------------------------------
if __name__ == "__main__":
    key = jax.random.PRNGKey(0)
    kx, kp = jax.random.split(key)

    batch, input_dim, output_dim = 8, 64, 784   # small LinearBLK instance
    x = jax.random.normal(kx, (batch, input_dim), jnp.float32)
    params = init_params(kp, input_dim, output_dim)

    forward, w_p, gb_p = build_forward(params, batch_hint=batch)
    out = jax.block_until_ready(forward(x, w_p, gb_p))
    assert out.shape == (batch, output_dim), out.shape

    ref = _reference_forward(x, params)
    max_err = float(jnp.max(jnp.abs(out - ref)))
    assert max_err < 2e-3, f"mismatch vs reference: {max_err}"

    print("KERNEL_OK")
</pallas_src>

<mosaic_0001>
module attributes {stable_mosaic.version = 11 : i64} {
  func.func @_linear_bn_lrelu_kernel(%arg0: i32, %arg1: memref<8x64xbf16, #tpu.memory_space<vmem>>, %arg2: memref<64x896xbf16, #tpu.memory_space<vmem>>, %arg3: memref<2x896xf32, #tpu.memory_space<vmem>>, %arg4: memref<8x896xf32, #tpu.memory_space<vmem>>) attributes {dimension_semantics = [#tpu.dimension_semantics<parallel>], iteration_bounds = array<i64: 1>, scalar_prefetch = 0 : i64, scratch_operands = 0 : i64, tpu.core_type = #tpu.core_type<tc>, window_params = [{pipeline_mode = #tpu.pipeline_mode<synchronous>, transform_indices = @transform_0, window_bounds = array<i64: 8, 64>}, {transform_indices = @transform_1, window_bounds = array<i64: 64, 896>}, {transform_indices = @transform_2, window_bounds = array<i64: 2, 896>}, {transform_indices = @transform_3, window_bounds = array<i64: 8, 896>}]} {
    %c0 = arith.constant 0 : index
    %c0_0 = arith.constant 0 : index
    %0 = vector.load %arg1[%c0, %c0_0] : memref<8x64xbf16, #tpu.memory_space<vmem>>, vector<8x64xbf16>
    %c0_1 = arith.constant 0 : index
    %c0_2 = arith.constant 0 : index
    %1 = vector.load %arg2[%c0_1, %c0_2] : memref<64x896xbf16, #tpu.memory_space<vmem>>, vector<64x896xbf16>
    %cst = arith.constant dense<0.000000e+00> : vector<8x896xf32>
    %2 = tpu.matmul %0, %1, %cst {dimension_numbers = #tpu.dot_dimension_numbers<[1], [0], [0], [1], [0, 0, 1, 1], [], []>} : vector<8x64xbf16>, vector<64x896xbf16>, vector<8x896xf32> -> vector<8x896xf32>
    %cst_3 = arith.constant dense<0.000000e+00> : vector<896xf32>
    %3 = vector.multi_reduction <add>, %2, %cst_3 [0] : vector<8x896xf32> to vector<896xf32>
    %4 = vector.shape_cast %3 : vector<896xf32> to vector<1x896xf32>
    %cst_4 = arith.constant 8.000000e+00 : f32
    %5 = vector.broadcast %cst_4 : f32 to vector<1x896xf32>
    %6 = arith.divf %4, %5 : vector<1x896xf32>
    %7 = vector.broadcast %6 : vector<1x896xf32> to vector<8x896xf32>
    %8 = arith.subf %2, %7 : vector<8x896xf32>
    %9 = arith.mulf %8, %8 : vector<8x896xf32>
    %cst_5 = arith.constant dense<0.000000e+00> : vector<896xf32>
    %10 = vector.multi_reduction <add>, %9, %cst_5 [0] : vector<8x896xf32> to vector<896xf32>
    %11 = vector.shape_cast %10 : vector<896xf32> to vector<1x896xf32>
    %cst_6 = arith.constant 8.000000e+00 : f32
    %12 = vector.broadcast %cst_6 : f32 to vector<1x896xf32>
    %13 = arith.divf %11, %12 : vector<1x896xf32>
    %c0_7 = arith.constant 0 : index
    %c0_8 = arith.constant 0 : index
    %14 = vector.load %arg3[%c0_7, %c0_8] : memref<2x896xf32, #tpu.memory_space<vmem>>, vector<2x896xf32>
    %15 = vector.extract_strided_slice %14 {offsets = [0, 0], sizes = [1, 896], strides = [1, 1]} : vector<2x896xf32> to vector<1x896xf32>
    %16 = vector.extract_strided_slice %14 {offsets = [1, 0], sizes = [1, 896], strides = [1, 1]} : vector<2x896xf32> to vector<1x896xf32>
    %cst_9 = arith.constant 9.99999974E-6 : f32
    %17 = vector.broadcast %cst_9 : f32 to vector<1x896xf32>
    %18 = arith.addf %13, %17 : vector<1x896xf32>
    %19 = math.rsqrt %18 : vector<1x896xf32>
    %20 = arith.mulf %15, %19 : vector<1x896xf32>
    %21 = arith.mulf %6, %20 : vector<1x896xf32>
    %22 = arith.subf %16, %21 : vector<1x896xf32>
    %23 = vector.broadcast %20 : vector<1x896xf32> to vector<8x896xf32>
    %24 = arith.mulf %2, %23 : vector<8x896xf32>
    %25 = vector.broadcast %22 : vector<1x896xf32> to vector<8x896xf32>
    %26 = arith.addf %24, %25 : vector<8x896xf32>
    %cst_10 = arith.constant 0.00999999977 : f32
    %27 = vector.broadcast %cst_10 : f32 to vector<8x896xf32>
    %28 = arith.mulf %27, %26 : vector<8x896xf32>
    %29 = arith.maximumf %26, %28 : vector<8x896xf32>
    %c0_11 = arith.constant 0 : index
    %c0_12 = arith.constant 0 : index
    %30 = vector.load %arg4[%c0_11, %c0_12] : memref<8x896xf32, #tpu.memory_space<vmem>>, vector<8x896xf32>
    tpu.vector_store %arg4[%c0_11, %c0_12], %29 {strides = array<i32>} : memref<8x896xf32, #tpu.memory_space<vmem>>, vector<8x896xf32>,
    return
  }
  func.func @transform_0(%arg0: i32) -> (i32, i32) {
    %c0_i32 = arith.constant 0 : i32
    %c0_i32_0 = arith.constant 0 : i32
    %c0_i32_1 = arith.constant 0 : i32
    return %c0_i32, %c0_i32_0 : i32, i32
  }
  func.func @transform_1(%arg0: i32) -> (i32, i32) {
    %c0_i32 = arith.constant 0 : i32
    %c0_i32_0 = arith.constant 0 : i32
    return %c0_i32, %arg0 : i32, i32
  }
  func.func @transform_2(%arg0: i32) -> (i32, i32) {
    %c0_i32 = arith.constant 0 : i32
    %c0_i32_0 = arith.constant 0 : i32
    return %c0_i32, %arg0 : i32, i32
  }
  func.func @transform_3(%arg0: i32) -> (i32, i32) {
    %c0_i32 = arith.constant 0 : i32
    %c0_i32_0 = arith.constant 0 : i32
    return %c0_i32, %arg0 : i32, i32
  }
}

</mosaic_0001>

<bundles_post_ra>
// kernel: forward.1
= control target key start
LH: loop header
LB: loop body
LE: loop exit
PB: predicated region body
PF: predicated region fallthrough
CT: control target
= control target key end

     0   :  { %8 = vsyncpa [#allocation3], 0  ;;  %s1095_s0 = inlined_call_operand.vmem [shape: bf16[8,64], index: 0, kind: input, shape index: {}]   ;;  %s1096_s1 = inlined_call_operand.hbm [shape: bf16[64,896], index: 1, kind: input, shape index: {}]   ;;  %s1097_s2 = inlined_call_operand.vmem [shape: f32[2,896], index: 2, kind: input, shape index: {}]   ;;  %s1098_s3 = inlined_call_operand.hbm [shape: f32[8,896], index: 3, kind: output, shape index: {}]  }
   0x1   :  { %9 = vsyncpa [#allocation4], 0  ;;  %s935_s12 = smov [#allocation2]  }
   0x2   :  { %s17_s13 = sshll.u32 %s935_s12, 4  ;;  %s18_s13 = int_to_ptr.vmem [resolvable:$true] %s17_s13 }
   0x3   :  { %s899_s14 = scalar_lea.vmem %s18_s13, 3584  ;;  %p904_p1 = scmp.lt.s32.totalorder %s18_s13, %s18_s13 }
   0x4   :  { %p900_p0 = scmp.ne.s32.totalorder %s18_s13, %s899_s14  ;;  %p905_p2 = scmp.lt.s32.totalorder %s899_s14, %s899_s14 }
   0x6   :  { %p906_p3 = por %p905_p2, %p904_p1 }
   0x8   :  { %p907_p4 = pnand %p906_p3, %p900_p0 }
   0xa   :  { %910 = shalt.err (!%p907_p4)
}
   0xb   :  { %s936_s15 = smov 448   ;;  %s937_s16 = smov 28  }
   0xc   :  { %23 = dma.hbm_to_vmem [thread:$0]  %s1096_s1, 3584, %s18_s13, [#allocation3], %s936_s15, %s936_s15, %s937_s16  }
   0xd   :  { %931 = dma.done.wait [#allocation3], 3584  }
   0xe   :  { %932 = vsyncadd [#allocation3], 4294963712  ;;  %v938_v0 = vmov 0   ;;  %v837_v1 = vld [vmem:[#allocation2 + $0xac] ss:$28 sps:$4 sm:$0xff]   ;;  %vm207_vm0 = vcmask 523264  }
   0xf   :  { %243 = vmatprep.mubr.bf16.mxu0 %v938_v0  ;;  %284 = vmatprep.mubr.bf16.mxu1 %v938_v0  ;;  %v839_v2 = vld [vmem:[#allocation2 + $0xb4] ss:$28 sps:$4 sm:$0xff]   ;;  %v841_v3 = vld [vmem:[#allocation2 + $0xa8] ss:$28 sps:$4 sm:$0xff]   ;;  %v845_v6 = vld [vmem:[#allocation2 + $0x7c] ss:$28 sps:$4 sm:$0xff]  }
  0x10   :  { %219 = vmatprep.subr.bf16.mxu0 %v837_v1  ;;  %v842_v4 = vld [vmem:[#allocation2 + $0xb0] ss:$28 sps:$4 sm:$0xff]   ;;  %260 = vmatprep.subr.bf16.mxu1 %v839_v2  ;;  %v848_v8 = vld [vmem:[#allocation2 + $0x78] ss:$28 sps:$4 sm:$0xff]   ;;  %v851_v10 = vld [vmem:[#allocation2 + $0x44] ss:$28 sps:$4 sm:$0xff]  }
  0x11   :  { %v843_v5 = vld [vmem:[#allocation2 + $0x74] ss:$28 sps:$4 sm:$0xff]   ;;  %220 = vmatpush1.bf16.msra.mxu0 %v841_v3  ;;  %261 = vmatpush1.bf16.msra.mxu1 %v842_v4  ;;  %v849_v9 = vld [vmem:[#allocation2 + $0x3c] ss:$28 sps:$4 sm:$0xff]   ;;  %v855_v13 = vld [vmem:[#allocation2 + $0x4] ss:$28 sps:$4 sm:$0xff]  }
  0x12   :  { %v847_v7 = vld [vmem:[#allocation2 + $0x70] ss:$28 sps:$4 sm:$0xff]   ;;  %221 = vmatprep.subr.bf16.mxu0 %v843_v5  ;;  %262 = vmatprep.subr.bf16.mxu1 %v845_v6  ;;  %v853_v11 = vld [vmem:[#allocation2 + $0x38] ss:$28 sps:$4 sm:$0xff]   ;;  %v854_v12 = vld [vmem:[#allocation2 + $0x40] ss:$28 sps:$4 sm:$0xff]  }
  0x13   :  { %v857_v14 = vld [vmem:[#allocation2 + $0xc] ss:$28 sps:$4 sm:$0xff]   ;;  %v859_v15 = vld [vmem:[#allocation2] ss:$28 sps:$4 sm:$0xff]   ;;  %v30_v18 = vld [vmem:[%s1095_s0] sm:$0xf] }
  0x14   :  { %v860_v16 = vld [vmem:[#allocation2 + $0x8] ss:$28 sps:$4 sm:$0xff]   ;;  %v863_v17 = vld [vmem:[#allocation2 + $0xbc] ss:$28 sps:$4 sm:$0xff]   ;;  %v939_v21 = vmov 0.0   ;;  %vm940_vm1 = vmmov 0  }
  0x15   :  { %222 = vmatpush1.bf16.msra.mxu0 %v847_v7  ;;  %263 = vmatpush1.bf16.msra.mxu1 %v848_v8  ;;  %v861_v19 = vld [vmem:[#allocation2 + $0xb8] ss:$28 sps:$4 sm:$0xff]   ;;  %v864_v20 = vld [vmem:[#allocation2 + $0xc0] ss:$28 sps:$4 sm:$0xff]   ;;  %v868_v24 = vld [vmem:[#allocation2 + $0x88] ss:$28 sps:$4 sm:$0xff]  }
  0x16   :  { %223 = vmatprep.subr.bf16.mxu0 %v849_v9  ;;  %264 = vmatprep.subr.bf16.mxu1 %v851_v10  ;;  %v867_v22 = vld [vmem:[#allocation2 + $0x84] ss:$28 sps:$4 sm:$0xff]   ;;  %v871_v25 = vld [vmem:[#allocation2 + $0x4c] ss:$28 sps:$4 sm:$0xff]   ;;  %v875_v28 = vld [vmem:[#allocation2 + $0x14] ss:$28 sps:$4 sm:$0xff]  }
  0x17   :  { %v865_v23 = vld [vmem:[#allocation2 + $0x80] ss:$28 sps:$4 sm:$0xff]   ;;  %v869_v26 = vld [vmem:[#allocation2 + $0x48] ss:$28 sps:$4 sm:$0xff]   ;;  %v872_v27 = vld [vmem:[#allocation2 + $0x50] ss:$28 sps:$4 sm:$0xff]  }
  0x18   :  { %v873_v29 = vld [vmem:[#allocation2 + $0x10] ss:$28 sps:$4 sm:$0xff]   ;;  %v876_v30 = vld [vmem:[#allocation2 + $0x18] ss:$28 sps:$4 sm:$0xff]  }
  0x19   :  { %224 = vmatpush1.bf16.msra.mxu0 %v853_v11  ;;  %265 = vmatpush1.bf16.msra.mxu1 %v854_v12 }
  0x1a   :  { %225 = vmatprep.subr.bf16.mxu0 %v855_v13  ;;  %266 = vmatprep.subr.bf16.mxu1 %v857_v14 }
  0x1d   :  { %226 = vmatpush1.bf16.msra.mxu0 %v859_v15  ;;  %267 = vmatpush1.bf16.msra.mxu1 %v860_v16 }
  0x1e   :  { %301 = vmatprep.subr.bf16.mxu0 %v863_v17  ;;  %817 = vmatprep.subr.bf16.mxu1 %v939_v21 }
  0x20   :  { %808 = vmatmul.mubr.msk.bf16.vlgmr.msra.gmra.mxu0 %vm207_vm0, %v30_v18  ;;  %809 = vmatmul.mubr.msk.bf16.vlgmr.msra.gmra.mxu1 %vm207_vm0, %v30_v18 }
  0x21   :  { %302 = vmatpush1.bf16.msra.mxu0 %v861_v19  ;;  %818 = vmatpush3.bf16.msra.mxu1 %v864_v20 }
  0x22   :  { %303 = vmatprep.subr.bf16.mxu0 %v867_v22  ;;  %819 = vmatprep.subr.bf16.mxu1 %v939_v21 }
  0x23   :  { %325 = vmatprep.mubr.bf16.mxu0 %v938_v0  ;;  %825 = vmatprep.mubr.msk.bf16.mxu1 %vm940_vm1, %v939_v21 }
  0x25   :  { %304 = vmatpush1.bf16.msra.mxu0 %v865_v23  ;;  %820 = vmatpush3.bf16.msra.mxu1 %v868_v24 }
  0x26   :  { %305 = vmatprep.subr.bf16.mxu0 %v871_v25  ;;  %821 = vmatprep.subr.bf16.mxu1 %v939_v21 }
  0x29   :  { %306 = vmatpush1.bf16.msra.mxu0 %v869_v26  ;;  %822 = vmatpush3.bf16.msra.mxu1 %v872_v27 }
  0x2a   :  { %307 = vmatprep.subr.bf16.mxu0 %v875_v28  ;;  %823 = vmatprep.subr.bf16.mxu1 %v939_v21 }
  0x2d   :  { %308 = vmatpush1.bf16.msra.mxu0 %v873_v29  ;;  %824 = vmatpush3.bf16.msra.mxu1 %v876_v30 }
  0x30   :  { %810 = vmatmul.mubr.msk.bf16.vlgmr.msra.gmra.mxu0 %vm207_vm0, %v30_v18  ;;  %826 = vmatmul.mubr.msk.bf16.vlgmr.msra.gmra.mxu1 %vm207_vm0, %v30_v18 }
  0xe0   :  { %v973_v31 = vpop.f32.mrf.mxu0  ;;  %v975_v32 = vpop.f32.mrf.mxu1 }
  0xe1   :  { %v374_v33 = vrot.slane %v973_v31, 4  ;;  %v386_v34 = vrot.slane %v975_v32, 4 }
  0xe2   :  { %v979_v35 = vpop.f32.mrf.mxu0  ;;  %v981_v36 = vpop.f32.mrf.mxu1 }
  0xe3   :  { %v375_v37 = vadd.f32 %v374_v33, %v973_v31  ;;  %v387_v38 = vadd.f32 %v386_v34, %v975_v32  ;;  %v380_v39 = vrot.slane %v979_v35, 4  ;;  %v392_v40 = vrot.slane %v981_v36, 4 }
  0xe4   :  { %v249_v41 = vpop.f32.mrf.mxu0  ;;  %v290_v42 = vpop.f32.mrf.mxu1 }
  0xe5   :  { %v376_v43 = vrot.slane %v375_v37, 2  ;;  %v388_v44 = vrot.slane %v387_v38, 2  ;;  %v381_v45 = vadd.f32 %v380_v39, %v979_v35  ;;  %v393_v46 = vadd.f32 %v392_v40, %v981_v36 }
  0xe6   :  { %v250_v47 = vpop.f32.mrf.mxu0  ;;  %v291_v48 = vpop.f32.mrf.mxu1 }
  0xe7   :  { %v377_v49 = vadd.f32 %v376_v43, %v375_v37  ;;  %v389_v50 = vadd.f32 %v388_v44, %v387_v38  ;;  %v382_v51 = vrot.slane %v381_v45, 2  ;;  %v394_v52 = vrot.slane %v393_v46, 2 }
  0xe9   :  { %v378_v53 = vrot.slane %v377_v49, 1  ;;  %v390_v54 = vrot.slane %v389_v50, 1  ;;  %v383_v55 = vadd.f32 %v382_v51, %v381_v45  ;;  %v395_v56 = vadd.f32 %v394_v52, %v393_v46 }
  0xeb   :  { %v379_v57 = vadd.f32 %v378_v53, %v377_v49  ;;  %v391_v58 = vadd.f32 %v390_v54, %v389_v50  ;;  %v384_v59 = vrot.slane %v383_v55, 1  ;;  %v396_v60 = vrot.slane %v395_v56, 1 }
  0xed   :  { %v989_v61 = vmul.f32 0.125, %v379_v57  ;;  %v991_v62 = vmul.f32 0.125, %v391_v58  ;;  %v385_v63 = vadd.f32 %v384_v59, %v383_v55  ;;  %v397_v0 = vadd.f32 %v396_v60, %v395_v56 }
  0xef   :  { %v424_v1 = vsub.f32 %v973_v31, %v989_v61  ;;  %v426_v2 = vsub.f32 %v975_v32, %v991_v62  ;;  %v997_v3 = vmul.f32 0.125, %v385_v63  ;;  %v999_v4 = vmul.f32 0.125, %v397_v0 }
  0xf0   :  { %v1001_v5 = vpop.f32.mrf.mxu0  ;;  %v1003_v6 = vpop.f32.mrf.mxu1 }
  0xf1   :  { %v431_v7 = vmul.f32 %v424_v1, %v424_v1  ;;  %v433_v8 = vmul.f32 %v426_v2, %v426_v2  ;;  %v425_v9 = vsub.f32 %v979_v35, %v997_v3  ;;  %v427_v10 = vsub.f32 %v981_v36, %v999_v4 }
  0xf2   :  { %v398_v11 = vrot.slane %v1001_v5, 4  ;;  %v410_v12 = vrot.slane %v1003_v6, 4  ;;  %v1011_v13 = vpop.f32.mrf.mxu0  ;;  %v827_v14 = vpop.f32.mrf.mxu1 }
  0xf3   :  { %v438_v15 = vrot.slane %v431_v7, 4  ;;  %v450_v16 = vrot.slane %v433_v8, 4  ;;  %v432_v17 = vmul.f32 %v425_v9, %v425_v9  ;;  %v434_v18 = vmul.f32 %v427_v10, %v427_v10 }
  0xf4   :  { %v399_v19 = vadd.f32 %v398_v11, %v1001_v5  ;;  %v411_v20 = vadd.f32 %v410_v12, %v1003_v6  ;;  %v404_v21 = vrot.slane %v1011_v13, 4  ;;  %v331_v22 = vpop.f32.mrf.mxu0  ;;  %v371_v23 = vpop.f32.mrf.mxu1 }
  0xf5   :  { %v439_v24 = vadd.f32 %v438_v15, %v431_v7  ;;  %v451_v25 = vadd.f32 %v450_v16, %v433_v8  ;;  %v444_v26 = vrot.slane %v432_v17, 4  ;;  %v456_v27 = vrot.slane %v434_v18, 4 }
  0xf6   :  { %v400_v28 = vrot.slane %v399_v19, 2  ;;  %v412_v29 = vrot.slane %v411_v20, 2  ;;  %v405_v30 = vadd.f32 %v404_v21, %v1011_v13  ;;  %v332_v33 = vpop.f32.mrf.mxu0  ;;  %v828_v34 = vpop.f32.mrf.mxu1 }
  0xf7   :  { %v440_v37 = vrot.slane %v439_v24, 2  ;;  %v452_v38 = vrot.slane %v451_v25, 2  ;;  %v445_v39 = vadd.f32 %v444_v26, %v432_v17  ;;  %v457_v40 = vadd.f32 %v456_v27, %v434_v18 }
  0xf8   :  { %v401_v41 = vadd.f32 %v400_v28, %v399_v19  ;;  %v413_v42 = vadd.f32 %v412_v29, %v411_v20  ;;  %v406_v43 = vrot.slane %v405_v30, 2 }
  0xf9   :  { %v441_v44 = vadd.f32 %v440_v37, %v439_v24  ;;  %v453_v45 = vadd.f32 %v452_v38, %v451_v25  ;;  %v446_v46 = vrot.slane %v445_v39, 2  ;;  %v458_v47 = vrot.slane %v457_v40, 2 }
  0xfa   :  { %v402_v48 = vrot.slane %v401_v41, 1  ;;  %v414_v49 = vrot.slane %v413_v42, 1  ;;  %v407_v50 = vadd.f32 %v406_v43, %v405_v30  ;;  %v941_v37 = vmov 1983009808  }
  0xfb   :  { %v442_v51 = vrot.slane %v441_v44, 1  ;;  %v454_v52 = vrot.slane %v453_v45, 1  ;;  %v447_v53 = vadd.f32 %v446_v46, %v445_v39  ;;  %v459_v54 = vadd.f32 %v458_v47, %v457_v40 }
  0xfc   :  { %v403_v55 = vadd.f32 %v402_v48, %v401_v41  ;;  %v415_v56 = vadd.f32 %v414_v49, %v413_v42  ;;  %v408_v57 = vrot.slane %v407_v50, 1  ;;  %v513_v38 = vunpack.c.l.s4 %v941_v37 }
  0xfd   :  { %v443_v58 = vadd.f32 %v442_v51, %v441_v44  ;;  %v455_v59 = vadd.f32 %v454_v52, %v453_v45  ;;  %v448_v60 = vrot.slane %v447_v53, 1  ;;  %v460_v63 = vrot.slane %v459_v54, 1 }
  0xfe   :  { %v1017_v0 = vmul.f32 0.125, %v403_v55  ;;  %v1019_v1 = vmul.f32 0.125, %v415_v56  ;;  %v409_v2 = vadd.f32 %v408_v57, %v407_v50  ;;  %v515_v39 = vlaneseq }
  0xff   :  { %v480_v7 = vmul.f32 0.125, %v443_v58  ;;  %v482_v8 = vmul.f32 0.125, %v455_v59  ;;  %v449_v9 = vadd.f32 %v448_v60, %v447_v53  ;;  %v461_v10 = vadd.f32 %v460_v63, %v459_v54 }
 0x100   :  { %v428_v11 = vsub.f32 %v1001_v5, %v1017_v0  ;;  %v430_v12 = vsub.f32 %v1003_v6, %v1019_v1  ;;  %v1025_v14 = vmul.f32 0.125, %v409_v2  ;;  %v514_v46 = vunpack.c.0.s8 %v513_v38 }
 0x101   :  { %v489_v15 = vadd.f32 1e-05, %v480_v7  ;;  %v491_v16 = vadd.f32 1e-05, %v482_v8  ;;  %v481_v17 = vmul.f32 0.125, %v449_v9  ;;  %v483_v18 = vmul.f32 0.125, %v461_v10 }
 0x102   :  { %v435_v19 = vmul.f32 %v428_v11, %v428_v11  ;;  %v437_v20 = vmul.f32 %v430_v12, %v430_v12  ;;  %v429_v21 = vsub.f32 %v1011_v13, %v1025_v14  ;;  %v1029_v47 = vshrl.u32 %v515_v39, 7  ;;  %v487_v11 = vld [vmem:[%s1097_s2] sm:$0xff] }
 0x103   :  { %877 = vrsqrt.f32 %v489_v15  ;;  %v490_v22 = vadd.f32 1e-05, %v481_v17  ;;  %v492_v23 = vadd.f32 1e-05, %v483_v18 }
 0x104   :  { %879 = vrsqrt.f32 %v491_v16  ;;  %v462_v24 = vrot.slane %v435_v19, 4  ;;  %v474_v25 = vrot.slane %v437_v20, 4  ;;  %v436_v26 = vmul.f32 %v429_v21, %v429_v21 }
 0x105   :  { %881 = vrsqrt.f32 %v490_v22  ;;  %v1032_v56 = vsub.s32 %v514_v46, %v1029_v47  ;;  %v1040_v12 = vsub.s32 0, %v1029_v47  ;;  %v555_v16 = vsub.s32 2, %v1029_v47 }
 0x106   :  { %883 = vrsqrt.f32 %v492_v23  ;;  %v463_v27 = vadd.f32 %v462_v24, %v435_v19  ;;  %v475_v28 = vadd.f32 %v474_v25, %v437_v20  ;;  %v468_v29 = vrot.slane %v436_v26, 4 }
 0x107   :  { %v559_v17 = vsub.s32 4, %v1029_v47  ;;  %v563_v18 = vsub.s32 6, %v1029_v47  ;;  %v680_v46 = vsub.s32 3, %v1029_v47 }
 0x108   :  { %v464_v30 = vrot.slane %v463_v27, 2  ;;  %v476_v33 = vrot.slane %v475_v28, 2  ;;  %v469_v34 = vadd.f32 %v468_v29, %v436_v26 }
 0x10a   :  { %v465_v40 = vadd.f32 %v464_v30, %v463_v27  ;;  %v477_v41 = vadd.f32 %v476_v33, %v475_v28  ;;  %v470_v42 = vrot.slane %v469_v34, 2 }
 0x10c   :  { %v466_v43 = vrot.slane %v465_v40, 1  ;;  %v478_v44 = vrot.slane %v477_v41, 1  ;;  %v471_v45 = vadd.f32 %v470_v42, %v469_v34 }
 0x10e   :  { %v467_v48 = vadd.f32 %v466_v43, %v465_v40  ;;  %v479_v49 = vadd.f32 %v478_v44, %v477_v41  ;;  %v472_v50 = vrot.slane %v471_v45, 1  ;;  %v1053_v41 = vsub.s32 1, %v1029_v47 }
 0x110   :  { %v878_v51 = vpop.eup %877  ;;  %v484_v52 = vmul.f32 0.125, %v467_v48  ;;  %v486_v53 = vmul.f32 0.125, %v479_v49  ;;  %v473_v54 = vadd.f32 %v472_v50, %v471_v45  ;;  %v488_v45 = vld [vmem:[%s1097_s2 + $0x8] sm:$0x3f]  ;;  %s942_s2 = smov [#allocation5]  }
 0x111   :  { %v880_v55 = vpop.eup %879  ;;  %s771_s23 = sshll.u32 %s942_s2, 4  ;;  %s772_s23 = int_to_ptr.vmem [resolvable:$true] %s771_s23 }
 0x112   :  { %v882_v57 = vpop.eup %881  ;;  %v493_v58 = vadd.f32 1e-05, %v484_v52  ;;  %v495_v59 = vadd.f32 1e-05, %v486_v53  ;;  %v485_v60 = vmul.f32 0.125, %v473_v54  ;;  %s911_s24 = scalar_lea.vmem %s772_s23, 896  ;;  %p916_p6 = scmp.lt.s32.totalorder %s772_s23, %s772_s23 }
 0x113   :  { %v884_v63 = vpop.eup %883  ;;  %v510_v2 = vcombine.low %v878_v51, %v882_v57  ;;  %p912_p5 = scmp.ne.s32.totalorder %s772_s23, %s911_s24  ;;  %p917_p7 = scmp.lt.s32.totalorder %s911_s24, %s911_s24 }
 0x114   :  { %v511_v7 = vcombine.low %v880_v55, %v884_v63  ;;  %885 = vrsqrt.f32 %v493_v58  ;;  %v494_v8 = vadd.f32 1e-05, %v485_v60 }
 0x115   :  { %v518_v9 = vrot.slane %v510_v2, %v1032_v56  ;;  %887 = vrsqrt.f32 %v495_v59  ;;  %p918_p8 = por %p917_p7, %p916_p6 }
 0x116   :  { %v525_v10 = vrot.slane %v511_v7, %v1032_v56  ;;  %889 = vrsqrt.f32 %v494_v8 }
 0x117   :  { %p919_p9 = pnand %p918_p8, %p912_p5 }
 0x118   :  { %v526_v15 = vcombine.low %v518_v9, %v525_v10 }
 0x11a   :  { %v545_v19 = vmul.f32 %v526_v15, %v487_v11 }
 0x11c   :  { %v552_v20 = vrot.slane %v545_v19, %v1040_v12  ;;  %v556_v21 = vrot.slane %v545_v19, %v555_v16  ;;  %v560_v22 = vrot.slane %v545_v19, %v559_v17  ;;  %v564_v23 = vrot.slane %v545_v19, %v563_v18 }
 0x11e   :  { %v584_v24 = vmul.f32 %v552_v20, %v989_v61  ;;  %v585_v25 = vmul.f32 %v556_v21, %v997_v3  ;;  %v586_v26 = vmul.f32 %v560_v22, %v991_v62  ;;  %v587_v27 = vmul.f32 %v564_v23, %v999_v4 }
 0x11f   :  { %v684_v61 = vsub.s32 5, %v1029_v47  ;;  %v688_v62 = vsub.s32 7, %v1029_v47  ;;  %v648_v43 = vrot.slane %v560_v22, %v1040_v12  ;;  %v652_v44 = vrot.slane %v564_v23, %v1040_v12 }
 0x120   :  { %v598_v28 = vcombine.low %v584_v24, %v585_v25  ;;  %v599_v29 = vcombine.low %v586_v26, %v587_v27  ;;  %v640_v50 = vrot.slane %v552_v20, %v1040_v12  ;;  %v644_v51 = vrot.slane %v556_v21, %v1040_v12 }
 0x121   :  { %v886_v30 = vpop.eup %885  ;;  %v667_v57 = vmul.f32 %v648_v43, %v975_v32  ;;  %v668_v58 = vmul.f32 %v652_v44, %v981_v36 }
 0x122   :  { %v888_v33 = vpop.eup %887  ;;  %v606_v34 = vrot.slane %v598_v28, %v1032_v56  ;;  %v613_v37 = vrot.slane %v599_v29, %v1032_v56  ;;  %v666_v8 = vmul.f32 %v644_v51, %v979_v35  ;;  %v665_v15 = vmul.f32 %v640_v50, %v973_v31 }
 0x123   :  { %v890_v38 = vpop.eup %889  ;;  %v541_v42 = vrot.slane %v888_v33, %v1032_v56 }
 0x124   :  { %v614_v39 = vcombine.low %v606_v34, %v613_v37  ;;  %v527_v40 = vcombine.low %v886_v30, %v890_v38 }
 0x126   :  { %v631_v3 = vrot.slane %v614_v39, 7  ;;  %v534_v4 = vrot.slane %v527_v40, %v1032_v56 }
 0x128   :  { %v635_v48 = vsub.f32 %v487_v11, %v631_v3  ;;  %v542_v49 = vcombine.low %v534_v4, %v541_v42 }
 0x12a   :  { %v677_v52 = vrot.slane %v635_v48, %v1053_v41  ;;  %v685_v53 = vrot.slane %v635_v48, %v684_v61  ;;  %v689_v54 = vrot.slane %v635_v48, %v688_v62  ;;  %v546_v55 = vmul.f32 %v542_v49, %v488_v45 }
 0x12b   :  { %v681_v59 = vrot.slane %v635_v48, %v680_v46 }
 0x12c   :  { %v720_v60 = vrot.slane %v685_v53, %v1053_v41  ;;  %v724_v47 = vrot.slane %v689_v54, %v1053_v41  ;;  %v568_v63 = vrot.slane %v546_v55, %v1040_v12  ;;  %v572_v2 = vrot.slane %v546_v55, %v555_v16 }
 0x12d   :  { %v576_v7 = vrot.slane %v546_v55, %v559_v17  ;;  %v716_v9 = vrot.slane %v681_v59, %v1053_v41  ;;  %v712_v10 = vrot.slane %v677_v52, %v1053_v41 }
 0x12e   :  { %v740_v11 = vadd.f32 %v724_v47, %v668_v58  ;;  %v588_v32 = vmul.f32 %v568_v63, %v1017_v0  ;;  %v589_v36 = vmul.f32 %v572_v2, %v1025_v14  ;;  %v739_v18 = vadd.f32 %v720_v60, %v667_v57 }
 0x12f   :  { %v590_v19 = vmul.f32 %v576_v7, %v1019_v1  ;;  %v738_v16 = vadd.f32 %v716_v9, %v666_v8  ;;  %v737_v17 = vadd.f32 %v712_v10, %v665_v15  ;;  %v656_v1 = vrot.slane %v568_v63, %v1040_v12 }
 0x130   :  { %v747_v20 = vmul.f32 0.01, %v740_v11  ;;  %v615_v21 = vcombine.low %v588_v32, %v589_v36  ;;  %v746_v26 = vmul.f32 0.01, %v739_v18  ;;  %v660_v29 = vrot.slane %v572_v2, %v1040_v12 }
 0x131   :  { %v629_v35 = vrot.slane %v590_v19, %v1032_v56  ;;  %v745_v24 = vmul.f32 0.01, %v738_v16  ;;  %v744_v25 = vmul.f32 0.01, %v737_v17  ;;  %v664_v33 = vrot.slane %v576_v7, %v1040_v12 }
 0x132   :  { %v754_v22 = vmax.f32 %v740_v11, %v747_v20  ;;  %v622_v23 = vrot.slane %v615_v21, %v1032_v56  ;;  %v753_v31 = vmax.f32 %v739_v18, %v746_v26  ;;  %v669_v38 = vmul.f32 %v656_v1, %v1001_v5 }
 0x133   :  { %v751_v14 = vmax.f32 %v737_v17, %v744_v25  ;;  %v752_v27 = vmax.f32 %v738_v16, %v745_v24  ;;  %v670_v39 = vmul.f32 %v660_v29, %v1011_v13  ;;  %v671_v40 = vmul.f32 %v664_v33, %v1003_v6 }
 0x134   :  { %761 = vst [vmem:[#allocation5 + $0x18] sm:$0xff] %v754_v22  ;;  %v630_v0 = vcombine.low %v622_v23, %v629_v35  ;;  %760 = vst [vmem:[#allocation5 + $0x10] sm:$0xff] %v753_v31 }
 0x135   :  { %758 = vst [vmem:[#allocation5] sm:$0xff] %v751_v14  ;;  %759 = vst [vmem:[#allocation5 + $0x8] sm:$0xff] %v752_v27 }
 0x136   :  { %v632_v28 = vrot.slane %v630_v0, 7 }
 0x138   :  { %v636_v30 = vsub.f32 %v488_v45, %v632_v28 }
 0x13a   :  { %v693_v56 = vrot.slane %v636_v30, %v1053_v41  ;;  %v697_v34 = vrot.slane %v636_v30, %v680_v46  ;;  %v701_v37 = vrot.slane %v636_v30, %v684_v61 }
 0x13c   :  { %v728_v3 = vrot.slane %v693_v56, %v1053_v41  ;;  %v732_v62 = vrot.slane %v697_v34, %v1053_v41  ;;  %v736_v4 = vrot.slane %v701_v37, %v1053_v41 }
 0x13e   :  { %v741_v42 = vadd.f32 %v728_v3, %v669_v38  ;;  %v742_v43 = vadd.f32 %v732_v62, %v670_v39  ;;  %v743_v44 = vadd.f32 %v736_v4, %v671_v40 }
 0x140   :  { %v749_v12 = vmul.f32 0.01, %v742_v43  ;;  %v748_v45 = vmul.f32 0.01, %v741_v42  ;;  %v750_v61 = vmul.f32 0.01, %v743_v44 }
 0x142   :  { %v756_v46 = vmax.f32 %v742_v43, %v749_v12  ;;  %v755_v5 = vmax.f32 %v741_v42, %v748_v45  ;;  %v757_v48 = vmax.f32 %v743_v44, %v750_v61 }
 0x144   :  { %763 = vst [vmem:[#allocation5 + $0x28] sm:$0xff] %v756_v46  ;;  %762 = vst [vmem:[#allocation5 + $0x20] sm:$0xff] %v755_v5 }
 0x145   :  { %764 = vst [vmem:[#allocation5 + $0x30] sm:$0xff] %v757_v48 }
 0x146   :  { %922 = shalt.err (!%p919_p9)
}
 0x147   :  { %774 = dma.vmem_to_hbm [thread:$0]  %s772_s23, 896, %s1098_s3, [#allocation4]  }
 0x148   :  { %933 = dma.done.wait [#allocation4], 896  }
 0x149   :  { %934 = vsyncadd [#allocation4], 4294966400 }
 0x14a   :  { %778 = vsyncpa [#allocation3], 1 }
 0x14b   :  { %779 = vsyncpa [#allocation4], 1 }

</bundles_post_ra>
